<compile_context>
chip_gen: v7x
topology: tpu7x:2x2x1
jax: 0.10.0
libtpu: 0.0.40
codegen_flags: <defaults>
</compile_context>

<pallas_src>
import functools

import jax
import jax.numpy as jnp
from jax.experimental import pallas as pl
from jax.experimental.pallas import tpu as pltpu


def _mmd_tile_kernel(neg_inv_bw_ref, row_ref, col_ref, out_ref, *,
                     batch_size, kernel_num, gram_dtype):
    i = pl.program_id(0)                 # row-block index ("parallel")
    j = pl.program_id(1)                 # col-block index (reduction, last)
    tm = row_ref.shape[0]
    tn = col_ref.shape[0]

    row = row_ref[...].astype(jnp.float32)              # (tm, D)
    col = col_ref[...].astype(jnp.float32)              # (tn, D)

    # Squared norms stay in f32 even if the gram runs in a narrower dtype.
    row_sq = jnp.sum(row * row, axis=1, keepdims=True)  # (tm, 1)
    col_sq = jnp.sum(col * col, axis=1)[None, :]         # (1, tn)

    # MXU gram of this tile, contracting the feature axis directly.
    if gram_dtype is None:
        ga, gb = row, col
    else:
        ga = row_ref[...].astype(gram_dtype)
        gb = col_ref[...].astype(gram_dtype)
    gram = jax.lax.dot_general(
        ga, gb, dimension_numbers=(((1,), (1,)), ((), ())),
        preferred_element_type=jnp.float32)               # (tm, tn)

    # Clamp: the expanded form can go slightly negative from cancellation.
    l2 = jnp.maximum(row_sq + col_sq - 2.0 * gram, 0.0)

    # Multi-scale Gaussian kernel sum with hoisted scalar reciprocals.
    ksum = jnp.zeros_like(l2)
    for s in range(kernel_num):                           # static, unrolled
        ksum = ksum + jnp.exp(l2 * neg_inv_bw_ref[s])

    # +/-1 quadrant sign: +1 on XX / YY blocks, -1 on XY / YX blocks.
    gr = jax.lax.broadcasted_iota(jnp.int32, (tm, tn), 0) + i * tm
    gc = jax.lax.broadcasted_iota(jnp.int32, (tm, tn), 1) + j * tn
    sign = jnp.where(jnp.logical_xor(gr < batch_size, gc < batch_size),
                     jnp.float32(-1.0), jnp.float32(1.0))

    contrib = jnp.sum(sign * ksum)                        # scalar for this tile

    # Per-row-block accumulator: the (8,128) output block keeps the same block
    # index across the j sweep, so it stays resident and we accumulate into it.
    @pl.when(j == 0)
    def _init():
        out_ref[...] = jnp.zeros_like(out_ref)

    out_ref[...] = out_ref[...] + contrib


def _pick_tile(n, feat, itemsize=4, cap=256, vmem_budget=8 * 1024 * 1024):
    """Largest multiple of 8 dividing n, capped by `cap` and a VMEM budget
    (2 operands x 2 pipeline buffers of a (tile, feat) block)."""
    max_by_vmem = max(8, vmem_budget // (4 * feat * itemsize))
    cap = min(cap, (max_by_vmem // 8) * 8)
    if n % 8 != 0:
        return n                          # single full-extent block
    best = 8
    t = 8
    while t <= min(cap, n):
        if n % t == 0:
            best = t
        t += 8
    return best


def mmd_loss(source, target, kernel_mul=2.0, kernel_num=5, fix_sigma=None,
             tm=None, tn=None, gram_dtype=None):
    """Pallas-backed equivalent of MMD_loss.forward(source, target)."""
    assert source.shape[0] == target.shape[0], "MMD loss assumes equal batch"
    assert source.shape[1] == target.shape[1]
    b, feat = source.shape
    n = 2 * b
    total = jnp.concatenate([source, target], axis=0)     # (N, D)

    # ---- O(N*D) prologue: analytic bandwidth + hoisted per-scale scalars.
    tot32 = total.astype(jnp.float32)
    if fix_sigma is not None:
        bandwidth = jnp.float32(fix_sigma)
    else:
        sum_sq = jnp.sum(tot32 * tot32)                    # sum_i ||x_i||^2
        sum_vec = jnp.sum(tot32, axis=0)                   # sum_i x_i
        l2_total = 2.0 * n * sum_sq - 2.0 * jnp.sum(sum_vec * sum_vec)
        bandwidth = l2_total / jnp.float32(n * n - n)
    bandwidth = bandwidth / jnp.float32(kernel_mul ** (kernel_num // 2))
    scales = jnp.asarray([kernel_mul ** s for s in range(kernel_num)],
                         dtype=jnp.float32)
    neg_inv_bw = (-1.0 / (bandwidth * scales)).astype(jnp.float32)

    # ---- Tiled streaming pass over the N x N pairwise matrix.
    tm = _pick_tile(n, feat) if tm is None else tm
    tn = _pick_tile(n, feat) if tn is None else tn
    assert n % tm == 0 and n % tn == 0, (n, tm, tn)
    grid_m, grid_n = n // tm, n // tn

    kernel = functools.partial(
        _mmd_tile_kernel, batch_size=b, kernel_num=kernel_num,
        gram_dtype=gram_dtype)

    out = pl.pallas_call(
        kernel,
        out_shape=jax.ShapeDtypeStruct((8 * grid_m, 128), jnp.float32),
        grid_spec=pltpu.PrefetchScalarGridSpec(
            num_scalar_prefetch=1,                         # neg_inv_bw -> SMEM
            grid=(grid_m, grid_n),
            in_specs=[
                pl.BlockSpec((tm, feat), lambda i, j, nb: (i, 0)),  # row block
                pl.BlockSpec((tn, feat), lambda i, j, nb: (j, 0)),  # col block
            ],
            out_specs=pl.BlockSpec((8, 128), lambda i, j, nb: (i, 0)),
        ),
        compiler_params=pltpu.CompilerParams(
            dimension_semantics=("parallel", "arbitrary")),
    )(neg_inv_bw, total, total)

    partials = out[0::8, 0]                                # one per row block
    return jnp.sum(partials) / jnp.float32(b * b)


def _mmd_loss_ref(source, target, kernel_mul=2.0, kernel_num=5,
                  fix_sigma=None):
    """Pure-JAX reference mirroring the PyTorch module (for verification)."""
    b = source.shape[0]
    total = jnp.concatenate([source, target], axis=0).astype(jnp.float32)
    n = total.shape[0]
    diff = total[None, :, :] - total[:, None, :]
    l2 = jnp.sum(diff * diff, axis=2)
    if fix_sigma is not None:
        bandwidth = jnp.float32(fix_sigma)
    else:
        bandwidth = jnp.sum(l2) / (n * n - n)
    bandwidth = bandwidth / (kernel_mul ** (kernel_num // 2))
    kernels = sum(jnp.exp(-l2 / (bandwidth * kernel_mul ** i))
                  for i in range(kernel_num))
    xx = kernels[:b, :b]
    yy = kernels[b:, b:]
    xy = kernels[:b, b:]
    yx = kernels[b:, :b]
    return jnp.mean(xx + yy - xy - yx)


if __name__ == "__main__":
    key = jax.random.PRNGKey(0)
    k1, k2 = jax.random.split(key)
    batch, hidden = 8, 32
    source = jax.random.normal(k1, (batch, hidden), dtype=jnp.float32)
    target = jax.random.normal(k2, (batch, hidden), dtype=jnp.float32) + 0.5

    # Explicit tm=tn=8 -> 2x2 grid: exercises tiling, sign tiles and the
    # per-row-block accumulation path.
    loss = mmd_loss(source, target, kernel_mul=2.0, kernel_num=5,
                    fix_sigma=None, tm=8, tn=8)
    loss = jax.block_until_ready(loss)
    ref = _mmd_loss_ref(source, target, 2.0, 5, None)
    assert jnp.allclose(loss, ref, rtol=1e-4, atol=1e-5), (loss, ref)

    # fix_sigma branch + automatic tile selection (single 16x16 block).
    loss2 = jax.block_until_ready(
        mmd_loss(source, target, kernel_mul=2.0, kernel_num=5, fix_sigma=1.0))
    ref2 = _mmd_loss_ref(source, target, 2.0, 5, 1.0)
    assert jnp.allclose(loss2, ref2, rtol=1e-4, atol=1e-5), (loss2, ref2)

    print("KERNEL_OK")
</pallas_src>

<mosaic_0001>
module attributes {stable_mosaic.version = 11 : i64} {
  func.func @_mmd_tile_kernel(%arg0: i32, %arg1: i32, %arg2: memref<5xf32, #tpu.memory_space<smem>>, %arg3: memref<8x32xf32, #tpu.memory_space<vmem>>, %arg4: memref<8x32xf32, #tpu.memory_space<vmem>>, %arg5: memref<8x128xf32, #tpu.memory_space<vmem>>) attributes {dimension_semantics = [#tpu.dimension_semantics<parallel>, #tpu.dimension_semantics<arbitrary>], iteration_bounds = array<i64: 2, 2>, scalar_prefetch = 1 : i64, scratch_operands = 0 : i64, tpu.core_type = #tpu.core_type<tc>, window_params = [{transform_indices = @transform_0, window_bounds = array<i64: 8, 32>}, {transform_indices = @transform_1, window_bounds = array<i64: 8, 32>}, {transform_indices = @transform_2, window_bounds = array<i64: 8, 128>}]} {
    %c0 = arith.constant 0 : index
    %c0_0 = arith.constant 0 : index
    %0 = vector.load %arg3[%c0, %c0_0] : memref<8x32xf32, #tpu.memory_space<vmem>>, vector<8x32xf32>
    %c0_1 = arith.constant 0 : index
    %c0_2 = arith.constant 0 : index
    %1 = vector.load %arg4[%c0_1, %c0_2] : memref<8x32xf32, #tpu.memory_space<vmem>>, vector<8x32xf32>
    %2 = arith.mulf %0, %0 : vector<8x32xf32>
    %cst = arith.constant dense<0.000000e+00> : vector<8xf32>
    %3 = vector.multi_reduction <add>, %2, %cst [1] : vector<8x32xf32> to vector<8xf32>
    %4 = vector.shape_cast %3 : vector<8xf32> to vector<8x1xf32>
    %5 = arith.mulf %1, %1 : vector<8x32xf32>
    %cst_3 = arith.constant dense<0.000000e+00> : vector<8xf32>
    %6 = vector.multi_reduction <add>, %5, %cst_3 [1] : vector<8x32xf32> to vector<8xf32>
    %7 = vector.shape_cast %6 : vector<8xf32> to vector<1x8xf32>
    %cst_4 = arith.constant dense<0.000000e+00> : vector<8x8xf32>
    %8 = tpu.matmul %0, %1, %cst_4 {dimension_numbers = #tpu.dot_dimension_numbers<[1], [1], [0], [0], [0, 0, 1, 0], [], []>} : vector<8x32xf32>, vector<8x32xf32>, vector<8x8xf32> -> vector<8x8xf32>
    %9 = vector.broadcast %4 : vector<8x1xf32> to vector<8x8xf32>
    %10 = vector.broadcast %7 : vector<1x8xf32> to vector<8x8xf32>
    %11 = arith.addf %9, %10 : vector<8x8xf32>
    %cst_5 = arith.constant 2.000000e+00 : f32
    %12 = vector.broadcast %cst_5 : f32 to vector<8x8xf32>
    %13 = arith.mulf %12, %8 : vector<8x8xf32>
    %14 = arith.subf %11, %13 : vector<8x8xf32>
    %cst_6 = arith.constant 0.000000e+00 : f32
    %15 = vector.broadcast %cst_6 : f32 to vector<8x8xf32>
    %16 = arith.maximumf %14, %15 : vector<8x8xf32>
    %cst_7 = arith.constant 0.000000e+00 : f32
    %17 = vector.broadcast %cst_7 : f32 to vector<8x8xf32>
    %c0_8 = arith.constant 0 : index
    %18 = memref.load %arg2[%c0_8] : memref<5xf32, #tpu.memory_space<smem>>
    %19 = vector.broadcast %18 : f32 to vector<8x8xf32>
    %20 = arith.mulf %16, %19 : vector<8x8xf32>
    %21 = math.exp %20 : vector<8x8xf32>
    %22 = arith.addf %17, %21 : vector<8x8xf32>
    %c1 = arith.constant 1 : index
    %23 = memref.load %arg2[%c1] : memref<5xf32, #tpu.memory_space<smem>>
    %24 = vector.broadcast %23 : f32 to vector<8x8xf32>
    %25 = arith.mulf %16, %24 : vector<8x8xf32>
    %26 = math.exp %25 : vector<8x8xf32>
    %27 = arith.addf %22, %26 : vector<8x8xf32>
    %c2 = arith.constant 2 : index
    %28 = memref.load %arg2[%c2] : memref<5xf32, #tpu.memory_space<smem>>
    %29 = vector.broadcast %28 : f32 to vector<8x8xf32>
    %30 = arith.mulf %16, %29 : vector<8x8xf32>
    %31 = math.exp %30 : vector<8x8xf32>
    %32 = arith.addf %27, %31 : vector<8x8xf32>
    %c3 = arith.constant 3 : index
    %33 = memref.load %arg2[%c3] : memref<5xf32, #tpu.memory_space<smem>>
    %34 = vector.broadcast %33 : f32 to vector<8x8xf32>
    %35 = arith.mulf %16, %34 : vector<8x8xf32>
    %36 = math.exp %35 : vector<8x8xf32>
    %37 = arith.addf %32, %36 : vector<8x8xf32>
    %c4 = arith.constant 4 : index
    %38 = memref.load %arg2[%c4] : memref<5xf32, #tpu.memory_space<smem>>
    %39 = vector.broadcast %38 : f32 to vector<8x8xf32>
    %40 = arith.mulf %16, %39 : vector<8x8xf32>
    %41 = math.exp %40 : vector<8x8xf32>
    %42 = arith.addf %37, %41 : vector<8x8xf32>
    %43 = tpu.iota {dimensions = array<i32: 0>} : vector<8x8xi32>
    %c8_i32 = arith.constant 8 : i32
    %44 = arith.muli %arg0, %c8_i32 : i32
    %45 = vector.broadcast %44 : i32 to vector<8x8xi32>
    %46 = arith.addi %43, %45 : vector<8x8xi32>
    %47 = tpu.iota {dimensions = array<i32: 1>} : vector<8x8xi32>
    %c8_i32_9 = arith.constant 8 : i32
    %48 = arith.muli %arg1, %c8_i32_9 : i32
    %49 = vector.broadcast %48 : i32 to vector<8x8xi32>
    %50 = arith.addi %47, %49 : vector<8x8xi32>
    %c8_i32_10 = arith.constant 8 : i32
    %51 = vector.broadcast %c8_i32_10 : i32 to vector<8x8xi32>
    %52 = arith.cmpi slt, %46, %51 : vector<8x8xi32>
    %c8_i32_11 = arith.constant 8 : i32
    %53 = vector.broadcast %c8_i32_11 : i32 to vector<8x8xi32>
    %54 = arith.cmpi slt, %50, %53 : vector<8x8xi32>
    %55 = arith.xori %52, %54 : vector<8x8xi1>
    %cst_12 = arith.constant -1.000000e+00 : f32
    %cst_13 = arith.constant 1.000000e+00 : f32
    %56 = vector.broadcast %cst_12 : f32 to vector<8x8xf32>
    %57 = vector.broadcast %cst_13 : f32 to vector<8x8xf32>
    %58 = arith.select %55, %56, %57 : vector<8x8xi1>, vector<8x8xf32>
    %59 = arith.mulf %58, %42 : vector<8x8xf32>
    %60 = vector.shape_cast %59 : vector<8x8xf32> to vector<1x8x8xf32>
    %cst_14 = arith.constant dense<0.000000e+00> : vector<1xf32>
    %61 = vector.multi_reduction <add>, %60, %cst_14 [1, 2] : vector<1x8x8xf32> to vector<1xf32>
    %62 = vector.shape_cast %61 : vector<1xf32> to vector<1x1x1xf32>
    %63 = vector.extract %62[0, 0, 0] : f32 from vector<1x1x1xf32>
    %c0_i32 = arith.constant 0 : i32
    %64 = arith.cmpi eq, %arg1, %c0_i32 : i32
    %65 = arith.extui %64 : i1 to i32
    %c0_i32_15 = arith.constant 0 : i32
    %66 = arith.cmpi ne, %65, %c0_i32_15 : i32
    scf.if %66 {
      %cst_20 = arith.constant 0.000000e+00 : f32
      %71 = vector.broadcast %cst_20 : f32 to vector<8x128xf32>
      %c0_21 = arith.constant 0 : index
      %c0_22 = arith.constant 0 : index
      %72 = vector.load %arg5[%c0_21, %c0_22] : memref<8x128xf32, #tpu.memory_space<vmem>>, vector<8x128xf32>
      tpu.vector_store %arg5[%c0_21, %c0_22], %71 {strides = array<i32>} : memref<8x128xf32, #tpu.memory_space<vmem>>, vector<8x128xf32>,
    } else {
    }
    %c0_16 = arith.constant 0 : index
    %c0_17 = arith.constant 0 : index
    %67 = vector.load %arg5[%c0_16, %c0_17] : memref<8x128xf32, #tpu.memory_space<vmem>>, vector<8x128xf32>
    %68 = vector.broadcast %63 : f32 to vector<8x128xf32>
    %69 = arith.addf %67, %68 : vector<8x128xf32>
    %c0_18 = arith.constant 0 : index
    %c0_19 = arith.constant 0 : index
    %70 = vector.load %arg5[%c0_18, %c0_19] : memref<8x128xf32, #tpu.memory_space<vmem>>, vector<8x128xf32>
    tpu.vector_store %arg5[%c0_18, %c0_19], %69 {strides = array<i32>} : memref<8x128xf32, #tpu.memory_space<vmem>>, vector<8x128xf32>,
    return
  }
  func.func @transform_0(%arg0: i32, %arg1: i32, %arg2: memref<5xf32, #tpu.memory_space<smem>>) -> (i32, i32) {
    %c0_i32 = arith.constant 0 : i32
    %c0_i32_0 = arith.constant 0 : i32
    return %arg0, %c0_i32 : i32, i32
  }
  func.func @transform_1(%arg0: i32, %arg1: i32, %arg2: memref<5xf32, #tpu.memory_space<smem>>) -> (i32, i32) {
    %c0_i32 = arith.constant 0 : i32
    %c0_i32_0 = arith.constant 0 : i32
    return %arg1, %c0_i32 : i32, i32
  }
  func.func @transform_2(%arg0: i32, %arg1: i32, %arg2: memref<5xf32, #tpu.memory_space<smem>>) -> (i32, i32) {
    %c0_i32 = arith.constant 0 : i32
    %c0_i32_0 = arith.constant 0 : i32
    return %arg0, %c0_i32 : i32, i32
  }
}

</mosaic_0001>

<bundles_post_ra>
// kernel: tpu_custom_call.1
= control target key start
LH: loop header
LB: loop body
LE: loop exit
PB: predicated region body
PF: predicated region fallthrough
CT: control target
= control target key end

     0   :  { %s1211_s0 = inlined_call_operand.hbm [shape: f32[5], index: 0, kind: input, shape index: {}]   ;;  %s1212_s1 = inlined_call_operand.hbm [shape: f32[16,32], index: 1, kind: input, shape index: {}]   ;;  %s1213_s2 = inlined_call_operand.hbm [shape: f32[16,32], index: 2, kind: input, shape index: {}]   ;;  %s1214_s3 = inlined_call_operand.hbm [shape: f32[16,128], index: 3, kind: output, shape index: {}]  }
   0x1   :  { %1222 = sst [smem:[#allocation16_spill]] %s1212_s1  ;;  %s661_s14 = scalar_lea.hbm %s1211_s0, 16 }
   0x2   :  { %p662_p0 = scmp.ne.s32.totalorder %s1211_s0, %s661_s14  ;;  %p665_p1 = scmp.lt.u32.totalorder %s661_s14, %s1211_s0 }
   0x4   :  { %p667_p2 = pnand %p665_p1, %p662_p0 }
   0x6   :  { %670 = shalt.err (!%p667_p2)  }
   0x7   :  { %s861_s19 = smov [#allocation3]  }
   0x8   :  { %9 = dma.hbm_to_smem %s1211_s0, 16, %s861_s19, [#allocation2] }
   0x9   :  { %803 = dma.done.wait [#allocation2], 16 }
   0xa   :  { %804 = vsyncadd [#allocation2], 4294967280 }
   0xb   :  { %11 = sfence }
   0xc   :  { %12 = vsyncpa [#allocation5], 0 }
   0xd   :  { %14 = vsyncpa [#allocation5 + $0x1], 0 }
   0xe   :  { %15 = vsyncpa [#allocation8], 0 }
   0xf   :  { %17 = vsyncpa [#allocation8 + $0x1], 0 }
  0x10   :  { %18 = vsyncpa [#allocation6], 0 }
  0x11   :  { %20 = vsyncpa [#allocation6 + $0x1], 0  ;;  %s901_s22 = smov 0   ;;  %s903_s23 = smov 0  }
  0x12   :  { %s905_s24 = smov 0   ;;  %s907_s25 = smov 0  }
  0x13   :  { %s909_s26 = smov 0   ;;  %s911_s0 = smov 0  }
  0x14   :  { %s913_s27 = smov 0   ;;  %s915_s28 = smov 0  }
  0x15   :  { %s917_s29 = smov 0   ;;  %s919_s30 = smov 0  }
  0x16   :  { %s921_s4 = smov 0  }
  0x17 LB: > { %s505_s5 = sadd.s32 4294967295, %s859_s4   ;;  %s506_s6 = sadd.s32 4294967294, %s859_s4   ;;  %s859_s4 = sphi %s921_s4, %s26_s4   ;;  %s855_s30 = sphi %s919_s30, %s1255_s30   ;;  %s851_s29 = sphi %s917_s29, %s1254_s29   ;;  %s847_s28 = sphi %s915_s28, %s1253_s28   ;;  %s843_s27 = sphi %s913_s27, %s1252_s27   ;;  %s839_s0 = sphi %s911_s0, %s1251_s0   ;;  %s835_s26 = sphi %s909_s26, %s1250_s26   ;;  %s831_s25 = sphi %s907_s25, %s1249_s25   ;;  %s827_s24 = sphi %s905_s24, %s1248_s24   ;;  %s823_s23 = sphi %s903_s23, %s1247_s23   ;;  %s819_s22 = sphi %s901_s22, %s1246_s22  }
  0x18   : > { %s38_s7 = sadd.s32 1, %s855_s30  ;;  %s45_s8 = sadd.s32 1, %s839_s0 }
  0x19   : > { %p52_p3 = scmp.ne.s32.totalorder %s839_s0, %s835_s26  ;;  %p1216_p4 = scmp.eq.s32.totalorder %s859_s4, 0 }
  0x1a   : > { %p58_p5 = scmp.ne.s32.totalorder %s835_s26, %s831_s25  ;;  %p965_p6 = scmp.eq.s32.totalorder %s505_s5, 0 }
  0x1b   : > { %p971_p7 = por %p1216_p4, %p52_p3  ;;  %p108_p8 = scmp.eq.s32.totalorder %s505_s5, 3 }
  0x1c   : > { %p977_p9 = por %p965_p6, %p58_p5  ;;  %p114_p10 = scmp.eq.s32.totalorder %s506_s6, 3 }
  0x1d   : > { %p981_p11 = por %p108_p8, %p52_p3  ;;  %p1215_p13 = scmp.lt.s32.totalorder %s859_s4, 4 }
  0x1e   : > { %s1225_s11 = scalar_select %p977_p9, 1, 0 }
  0x1f   : > { %s1226_s12 = scalar_select %p981_p11, 1, 0 }
  0x20   : > { %p985_p12 = por %p114_p10, %p58_p5  ;;  %s134_s14 = sand.u32 1, %s839_s0  }
  0x21   : > { %s510_s15 = sshll.u32 %s855_s30, 7  ;;  %s509_s16 = sshll.u32 %s134_s14, 3 }
  0x22   : > { %s1227_s13 = scalar_select %p985_p12, 1, 0 }
  0x23   : > { %s1229_s1 = sld [smem:[#allocation16_spill]]  ;;  %s138_s20 = scalar_lea.vmem [#allocation4], %s509_s16 }
  0x24   : > { %1228 = sst [smem:[#allocation14_spill]] %s1227_s13  ;;  %s145_s21 = sshll.u32 %s138_s20, 4  ;;  %s1005_s21 = int_to_ptr.vmem [resolvable:$true] %s145_s21 }
  0x25   : > { %p1001_p0 = pnand %p1215_p13, %p971_p7  ;;  %s135_s6 = scalar_lea.sflag [#allocation5], %s134_s14 }
  0x27   : > { %p673_p5 = pneg %p1001_p0 }
  0x29   : > { %s995_s19 = scalar_lea.hbm %s1229_s1, %s510_s15  ;;  %s676_s17 = scalar_lea.hbm %s1229_s1, 256 }
  0x2a   : > { %s671_s15 = scalar_lea.hbm %s995_s19, 128  ;;  %p677_p7 = scmp.lt.u32.totalorder %s995_s19, %s1229_s1 }
  0x2b   : > { %p672_p3 = scmp.ne.s32.totalorder %s995_s19, %s671_s15  ;;  %p678_p13 = scmp.lt.u32.totalorder %s676_s17, %s671_s15 }
  0x2c   : > { %p680_p1 = scmp.lt.u32.totalorder %s671_s15, %s995_s19 }
  0x2d   : > { %p674_p8 = pnand %p673_p5, %p672_p3  ;;  %p679_p4 = por %p678_p13, %p677_p7 }
  0x2f   : > { %p675_p10 = pneg %p674_p8  ;;  %p681_p2 = por %p680_p1, %p679_p4 }
  0x31   : > { %p682_p12 = pnand %p681_p2, %p675_p10 }
  0x33   : > { %685 = shalt.err (!%p682_p12)
}
  0x34   : > { %s686_s14 = scalar_lea.vmem %s1005_s21, 128  ;;  %s862_s10 = smov [#allocation4]  }
  0x35   : > { %p687_p3 = scmp.ne.s32.totalorder %s1005_s21, %s686_s14  ;;  %s691_s16 = sshll.u32 %s862_s10, 4  ;;  %s692_s16 = int_to_ptr.vmem [resolvable:$false] %s691_s16 }
  0x36   : > { %s693_s18 = scalar_lea.vmem %s692_s16, 256  ;;  %p694_p9 = scmp.lt.s32.totalorder %s1005_s21, %s692_s16 }
  0x37   : > { %p689_p8 = pnand %p687_p3, %p673_p5  ;;  %p695_p13 = scmp.lt.s32.totalorder %s693_s18, %s686_s14 }
  0x39   : > { %p690_p11 = pneg %p689_p8  ;;  %p696_p7 = por %p695_p13, %p694_p9 }
  0x3b   : > { %p697_p4 = pnand %p696_p7, %p690_p11 }
  0x3d   : > { %700 = shalt.err (!%p697_p4)
}
  0x3e   : > { %548 = dma.hbm_to_vmem [thread:$0]  (!%p1001_p0), %s995_s19, 128, %s1005_s21, %s135_s6  }
  0x3f   : > { %p1231_p9 = scmp.lt.s32.totalorder %s859_s4, 5  ;;  %p1232_p11 = scmp.ge.s32.totalorder %s859_s4, 1 }
  0x40   : > { %s35_s15 = sadd.s32 1, %s851_s29  ;;  %s71_s17 = sadd.s32 1, %s827_s24 }
  0x41   : > { %p1038_p12 = pnand %p1232_p11, %p1231_p9  ;;  %p36_p1 = scmp.ge.s32.totalorder %s35_s15, 2 }
  0x42   : > { %p78_p2 = scmp.ne.s32.totalorder %s827_s24, %s823_s23  ;;  %p84_p5 = scmp.ne.s32.totalorder %s823_s23, %s819_s22 }
  0x43   : > { %s1257_s15 = smov (%p36_p1, %s35_s15), 0  ;;  %s1259_s7 = smov (!%p36_p1, %s38_s7), %s855_s30 }
  0x44   : > { %1234 = sst [smem:[#allocation15_spill]] %s1257_s15  ;;  %s68_s19 = ssub.s32 %s851_s29, %s1257_s15 }
  0x45   : > { %p1235_p0 = scmp.eq.s32.totalorder %s859_s4, 0  ;;  %p40_p3 = scmp.ge.s32.totalorder %s1259_s7, 2 }
  0x46   : > { %p69_p8 = scmp.eq.s32.totalorder %s68_s19, 0  ;;  %p1063_p13 = por %p84_p5, %p965_p6 }
  0x47   : > { %p1057_p10 = por %p78_p2, %p1235_p0  ;;  %s152_s22 = sand.u32 1, %s827_s24  }
  0x48   : > { %s1237_s6 = scalar_select %p1063_p13, 1, 0 }
  0x49   : > { %s1261_s7 = smov (%p40_p3, %s1259_s7), 0  ;;  %s511_s10 = sshll.u32 %s152_s22, 3 }
  0x4a   : > { %s1071_s20 = scalar_select %p69_p8, %s827_s24, %s71_s17  }
  0x4b   : > { %s42_s14 = ssub.s32 %s855_s30, %s1261_s7  ;;  %s512_s16 = sshll.u32 %s851_s29, 7 }
  0x4c   : > { %p43_p7 = scmp.eq.s32.totalorder %s42_s14, 0  ;;  %s1084_s9 = scalar_lea.hbm %s1213_s2, %s512_s16 }
  0x4d   : > { %s156_s15 = scalar_lea.vmem [#allocation7], %s511_s10  ;;  %p1238_p6 = scmp.lt.s32.totalorder %s859_s4, 4 }
  0x4e   : > { %s1079_s18 = scalar_select %p43_p7, %s839_s0, %s45_s8  }
  0x4f   : > { %s163_s13 = sshll.u32 %s156_s15, 4  ;;  %p1092_p4 = pnand %p1238_p6, %p1057_p10  ;;  %s1086_s13 = int_to_ptr.vmem [resolvable:$true] %s163_s13 }
  0x50   : > { %s153_s8 = scalar_lea.sflag [#allocation8], %s152_s22  ;;  %s701_s1 = scalar_lea.hbm %s1084_s9, 128 }
  0x51   : > { %p702_p9 = scmp.ne.s32.totalorder %s1084_s9, %s701_s1  ;;  %p703_p11 = pneg %p1092_p4 }
  0x52   : > { %s706_s21 = scalar_lea.hbm %s1213_s2, 256  ;;  %p707_p5 = scmp.lt.u32.totalorder %s1084_s9, %s1213_s2 }
  0x53   : > { %p704_p1 = pnand %p703_p11, %p702_p9  ;;  %p708_p0 = scmp.lt.u32.totalorder %s706_s21, %s701_s1 }
  0x54   : > { %p710_p3 = scmp.lt.u32.totalorder %s701_s1, %s1084_s9 }
  0x55   : > { %p705_p2 = pneg %p704_p1  ;;  %p709_p10 = por %p708_p0, %p707_p5 }
  0x57   : > { %p711_p8 = por %p710_p3, %p709_p10 }
  0x59   : > { %p712_p7 = pnand %p711_p8, %p705_p2 }
  0x5b   : > { %715 = shalt.err (!%p712_p7)
}
  0x5c   : > { %s716_s22 = scalar_lea.vmem %s1086_s13, 128  ;;  %s863_s19 = smov [#allocation7]  }
  0x5d   : > { %p717_p6 = scmp.ne.s32.totalorder %s1086_s13, %s716_s22  ;;  %s721_s15 = sshll.u32 %s863_s19, 4  ;;  %s722_s15 = int_to_ptr.vmem [resolvable:$false] %s721_s15 }
  0x5e   : > { %s723_s14 = scalar_lea.vmem %s722_s15, 256  ;;  %p724_p13 = scmp.lt.s32.totalorder %s1086_s13, %s722_s15 }
  0x5f   : > { %p719_p9 = pnand %p717_p6, %p703_p11  ;;  %p725_p5 = scmp.lt.s32.totalorder %s723_s14, %s716_s22 }
  0x61   : > { %p720_p1 = pneg %p719_p9  ;;  %p726_p0 = por %p725_p5, %p724_p13 }
  0x63   : > { %p727_p10 = pnand %p726_p0, %p720_p1 }
  0x65   : > { %730 = shalt.err (!%p727_p10)
}
  0x66   : > { %551 = dma.hbm_to_vmem [thread:$0]  (!%p1092_p4), %s1084_s9, 128, %s1086_s13, %s153_s8  }
  0x67   : > { %172 = sbr.rel (%p1038_p12) target bundleno = 594 (0x252), region = 28  ;;  %s1124_s1 = sand.u32 (!%p1038_p12), 1, %s835_s26  }
  0x68   : > { %s514_s21 = sshll.u32 (!%p1038_p12), %s1124_s1, 3  ;;  %s175_s10 = scalar_lea.sflag (!%p1038_p12), [#allocation5], %s1124_s1 }
  0x69   : > { %s178_s16 = scalar_lea.vmem (!%p1038_p12), [#allocation4], %s514_s21  ;;  %p1240_p13 = scmp.ne.s32.totalorder (!%p1038_p12), %s1225_s11, 0 }
  0x6e   : > { %806 = dma.done.wait (%p1240_p13), %s175_s10, 128  }
  0x6f   : > { %808 = vsyncadd (%p1240_p13), %s175_s10, 4294967168  ;;  %s183_s13 = sand.u32 1, %s823_s23   ;;  %p1241_p12 = scmp.ne.s32.totalorder %s1237_s6, 0 }
  0x70   : > { %s515_s5 = sshll.u32 %s183_s13, 3  ;;  %s184_s9 = scalar_lea.sflag [#allocation8], %s183_s13 }
  0x71   : > { %s187_s17 = scalar_lea.vmem [#allocation7], %s515_s5 }
  0x72   : > { %810 = dma.done.wait (%p1241_p12), %s184_s9, 128  }
  0x73   : > { %812 = vsyncadd (%p1241_p12), %s184_s9, 4294967168  ;;  %v864_v0 = vmov 0.0   ;;  %vm865_vm0 = vmmov 0   ;;  %vm216_vm1 = vcmask 261120   ;;  %v214_v1 = vld [vmem:[%s187_s17] sm:$0xff]  ;;  %v213_v2 = vld [vmem:[%s178_s16] sm:$0xff]  ;;  %v301_v7 = vlaneseq }
  0x74   : > { %532 = vmatprep.subr.mxu0 %v864_v0  ;;  %534 = vmatprep.mubr.msk.f32.mxu0 %vm865_vm0, %v864_v0  ;;  %v220_v3 = vmul.f32 %v214_v1, %v214_v1  ;;  %v215_v4 = vmul.f32 %v213_v2, %v213_v2  ;;  %s324_s11 = sld [smem:[#allocation3]]  ;;  %s519_s6 = sld [smem:[#allocation3 + $0x1]]  ;;  %v866_v47 = vmov 1.0   ;;  %vm367_vm5 = vcmask 64512  }
  0x75   : > { %533 = vmatpush3.xpose.msk.msra.mxu0 %vm216_vm1, %v214_v1  ;;  %v302_v8 = vand.u32 127, %v301_v7  ;;  %v304_v9 = vshrl.u32 %v301_v7, 7  ;;  %s520_s8 = sld [smem:[#allocation3 + $0x2]]  ;;  %s521_s22 = sld [smem:[#allocation3 + $0x3]] }
  0x76   : > { %v221_v5 = vsel %vm216_vm1, %v220_v3, 0.0  ;;  %v217_v6 = vsel %vm216_vm1, %v215_v4, 0.0  ;;  %s522_s19 = sld [smem:[#allocation3 + $0x4]]  ;;  %s523_s15 = sshll.u32 %s847_s28, 3 }
  0x77   : > { %222 = vadd.xlane.f32.xlu0 %v221_v5  ;;  %v305_v11 = vsub.s32 %v302_v8, %v304_v9  ;;  %s524_s14 = sshll.u32 %s843_s27, 3  ;;  %v357_v35 = vstv %s523_s15  ;;  %s212_s16 = scalar_lea.vmem [#allocation9], %s514_s21 }
  0x78   : > { %535 = vmatmul.mubr.msk.f32.vlgmr.msra.gmra.mrb[0].mxu0 %vm216_vm1, %v213_v2  ;;  %v360_v36 = vstv %s524_s14  ;;  %v358_v37 = vadd.s32 %v357_v35, %v304_v9  ;;  %p525_p4 = scmp.ne.s32.totalorder %s843_s27, 0 }
  0x79   : > { %v361_v38 = vadd.s32 %v360_v36, %v302_v8  ;;  %v867_v59 = vmov (!%p525_p4), 0.0  }
  0x7a   : > { %v325_v19 = vstv %s324_s11  ;;  %v331_v20 = vstv %s519_s6  ;;  %vm362_vm2 = vcmp.lt.s32.totalorder %v358_v37, 8  ;;  %382 = vst [vmem:[%s212_s16] sm:$0xff] (!%p525_p4), %v867_v59 }
  0x7b   : > { %218 = vadd.xlane.f32.xlu0 %v217_v6  ;;  %v337_v21 = vstv %s520_s8  ;;  %v343_v22 = vstv %s521_s22  ;;  %vm363_vm3 = vcmp.lt.s32.totalorder %v361_v38, 8 }
  0x7c   : > { %v349_v24 = vstv %s522_s19  ;;  %vm364_vm4 = vmxor %vm362_vm2, %vm363_vm3 }
  0x7d   : > { %v365_v48 = vsel %vm364_vm4, -1.0, %v866_v47 }
 0x104   : > { %v223_v10 = vpop.xlane.xlu0 %222 }
 0x105   : > { %v306_v12 = vrot.slane %v223_v10, %v305_v11 }
 0x108   : > { %v219_v13 = vpop.xlane.xlu0 %218 }
 0x109   : > { %v320_v15 = vadd.f32 %v306_v12, %v219_v13 }
 0x14b   : > { %v296_v14 = vpop.f32.mrb[0].mxu0 }
 0x14c   : > { %v321_v16 = vmul.f32 2.0, %v296_v14  ;;  %v536_v17 = vpop.f32.mrb[1].mxu0 }
 0x14e   : > { %v322_v18 = vsub.f32 %v320_v15, %v321_v16 }
 0x150   : > { %v323_v23 = vmax.f32 %v322_v18, 0.0 }
 0x152   : > { %v326_v25 = vmul.f32 %v325_v19, %v323_v23  ;;  %v332_v26 = vmul.f32 %v331_v20, %v323_v23  ;;  %v338_v27 = vmul.f32 %v337_v21, %v323_v23  ;;  %v344_v28 = vmul.f32 %v343_v22, %v323_v23 }
 0x153   : > { %v350_v32 = vmul.f32 %v349_v24, %v323_v23 }
 0x154   : > { %v327_v29 = vmul.f32 1.442695, %v326_v25  ;;  %v333_v30 = vmul.f32 1.442695, %v332_v26  ;;  %v339_v31 = vmul.f32 1.442695, %v338_v27 }
 0x155   : > { %v345_v33 = vmul.f32 1.442695, %v344_v28  ;;  %v351_v34 = vmul.f32 1.442695, %v350_v32 }
 0x156   : > { %651 = vpow2.f32 %v327_v29 }
 0x157   : > { %653 = vpow2.f32 %v333_v30 }
 0x158   : > { %655 = vpow2.f32 %v339_v31 }
 0x159   : > { %657 = vpow2.f32 %v345_v33 }
 0x15a   : > { %659 = vpow2.f32 %v351_v34 }
 0x160   : > { %v652_v39 = vpop.eup %651 }
 0x161   : > { %v654_v40 = vpop.eup %653 }
 0x162   : > { %v335_v41 = vadd.f32 %v654_v40, %v652_v39  ;;  %v656_v42 = vpop.eup %655 }
 0x163   : > { %v658_v44 = vpop.eup %657 }
 0x164   : > { %v341_v43 = vadd.f32 %v656_v42, %v335_v41  ;;  %v660_v46 = vpop.eup %659 }
 0x166   : > { %v347_v45 = vadd.f32 %v658_v44, %v341_v43 }
 0x168   : > { %v353_v49 = vadd.f32 %v660_v46, %v347_v45 }
 0x16a   : > { %v366_v50 = vmul.f32 %v365_v48, %v353_v49 }
 0x16c   : > { %v368_v51 = vsel %vm367_vm5, %v366_v50, 0.0 }
 0x16d   : > { %369 = vadd.xlane.f32.xlu1 %v368_v51 }
 0x1fa   : > { %v370_v52 = vpop.xlane.xlu1 %369 }
 0x1fb   : > { %v371_v53 = vrot.slane %v370_v52, 4 }
 0x1fd   : > { %v372_v54 = vadd.f32 %v371_v53, %v370_v52 }
 0x1ff   : > { %v373_v55 = vrot.slane %v372_v54, 2 }
 0x201   : > { %v374_v56 = vadd.f32 %v373_v55, %v372_v54 }
 0x203   : > { %v375_v57 = vrot.slane %v374_v56, 1 }
 0x205   : > { %v376_v58 = vadd.f32 %v375_v57, %v374_v56 }
 0x207   : > { %537 = vpush %v376_v58 }
 0x232   : > { %381 = sbr.rel (%p525_p4) target bundleno = 569 (0x239), region = 40 }
 0x238   : > { %s538_s10 = spop %537 }
 0x239 PF: > { %v383_v60 = vld [vmem:[%s212_s16] sm:$0xff]  ;;  %v384_v61 = vstv %s538_s10  ;;  %s527_s13 = sshll.u32 %s847_s28, 7  ;;  %s401_s11 = sshll.u32 %s212_s16, 4  ;;  %s1150_s11 = int_to_ptr.vmem [resolvable:$true] %s401_s11 }
 0x23a   : > { %v385_v62 = vadd.f32 %v384_v61, %v383_v60  ;;  %s1148_s17 = scalar_lea.hbm %s1214_s3, %s527_s13  ;;  %s388_s27 = scalar_lea.sflag [#allocation6], %s1124_s1 }
 0x23b   : > { %s731_s21 = scalar_lea.vmem %s1150_s11, 128  ;;  %p1242_p2 = scmp.ne.s32.totalorder %s1226_s12, 0 }
 0x23c   : > { %386 = vst [vmem:[%s212_s16] sm:$0xff] %v385_v62  ;;  %p732_p11 = scmp.ne.s32.totalorder %s1150_s11, %s731_s21  ;;  %s868_s28 = smov [#allocation9]  }
 0x23d   : > { %s735_s6 = sshll.u32 %s868_s28, 4  ;;  %s736_s6 = int_to_ptr.vmem [resolvable:$false] %s735_s6 }
 0x23e   : > { %p733_p3 = pnand %p732_p11, %p1242_p2  ;;  %s737_s8 = scalar_lea.vmem %s736_s6, 256 }
 0x23f   : > { %p738_p7 = scmp.lt.s32.totalorder %s1150_s11, %s736_s6  ;;  %p739_p6 = scmp.lt.s32.totalorder %s737_s8, %s731_s21 }
 0x240   : > { %p734_p8 = pneg %p733_p3 }
 0x241   : > { %p740_p9 = por %p739_p6, %p738_p7 }
 0x243   : > { %p741_p1 = pnand %p740_p9, %p734_p8 }
 0x245   : > { %744 = shalt.err (!%p741_p1)
}
 0x246   : > { %s745_s1 = scalar_lea.hbm %s1148_s17, 128  ;;  %s749_s15 = scalar_lea.hbm %s1214_s3, 256 }
 0x247   : > { %p746_p5 = scmp.ne.s32.totalorder %s1148_s17, %s745_s1  ;;  %p750_p13 = scmp.lt.u32.totalorder %s1148_s17, %s1214_s3 }
 0x248   : > { %p751_p12 = scmp.lt.u32.totalorder %s749_s15, %s745_s1  ;;  %p753_p11 = scmp.lt.u32.totalorder %s745_s1, %s1148_s17 }
 0x249   : > { %p747_p0 = pnand %p746_p5, %p1242_p2 }
 0x24a   : > { %p752_p4 = por %p751_p12, %p750_p13 }
 0x24b   : > { %p748_p10 = pneg %p747_p0 }
 0x24c   : > { %p754_p3 = por %p753_p11, %p752_p4 }
 0x24e   : > { %p755_p8 = pnand %p754_p3, %p748_p10 }
 0x250   : > { %758 = shalt.err (!%p755_p8)
}
 0x251   : > { %543 = dma.vmem_to_hbm [thread:$0]  (%p1242_p2), %s1150_s11, 128, %s1148_s17, %s388_s27  }
 0x252 PF: > { %s1243_s16 = sld [smem:[#allocation14_spill]]  ;;  %p557_p7 = scmp.ge.s32.totalorder %s859_s4, 2 }
 0x253   : > { %s413_s13 = sand.u32 1, %s831_s25  }
 0x254   : > { %s414_s5 = scalar_lea.sflag [#allocation6], %s413_s13 }
 0x258   : > { %p1244_p6 = scmp.ne.s32.totalorder %s1243_s16, 0 }
 0x25a   : > { %p553_p9 = pnand %p557_p7, %p1244_p6 }
 0x25c   : > { %814 = dma.done.wait (!%p553_p9), %s414_s5, 128  }
 0x25d   : > { %816 = vsyncadd (!%p553_p9), %s414_s5, 4294967168  ;;  %s26_s4 = sadd.s32 1, %s859_s4   ;;  %s1245_s12 = sld [smem:[#allocation15_spill]] }
 0x25e   : > { %p23_p1 = scmp.ge.s32.totalorder %s26_s4, 6   ;;  %s1246_s22 = smov %s823_s23 }
 0x25f   : > { %s1247_s23 = smov %s827_s24  ;;  %s1248_s24 = smov %s1071_s20 }
 0x260   : > { %s1249_s25 = smov %s835_s26  ;;  %s1250_s26 = smov %s839_s0 }
 0x261   : > { %s1251_s0 = smov %s1079_s18  ;;  %s1252_s27 = smov %s851_s29 }
 0x262   : > { %s1253_s28 = smov %s855_s30  ;;  %s1255_s30 = smov %s1261_s7 }
 0x263   : > { %s1254_s29 = smov %s1245_s12  ;;  %25 = sbr.rel (!%p23_p1) target bundleno = 23 (0x17), region = 90 }
 0x26a   :  { %419 = vsyncpa [#allocation5], 1 }
 0x26b   :  { %421 = vsyncpa [#allocation5 + $0x1], 1 }
 0x26c   :  { %422 = vsyncpa [#allocation8], 1 }
 0x26d   :  { %424 = vsyncpa [#allocation8 + $0x1], 1 }
 0x26e   :  { %425 = vsyncpa [#allocation6], 1 }
 0x26f   :  { %427 = vsyncpa [#allocation6 + $0x1], 1 }

</bundles_post_ra>
